<compile_context>
chip_gen: v5e
topology: v5e:2x2
jax: 0.10.0
libtpu: 0.0.40
codegen_flags: <defaults>
</compile_context>

<pallas_src>
import jax
import jax.numpy as jnp
from jax.experimental import pallas as pl
from jax.experimental.pallas import tpu as pltpu


def _round_up(x, m):
    return ((x + m - 1) // m) * m


# ----------------------------- kernels -------------------------------------


def _pooler_gate_kernel(h0_ref, wp_ref, bp_ref, wg_ref, bg_ref,
                        cls_ref, gate_ref):
    # pooler_output = tanh(h0 @ Wp + bp)           -> [B_pad, H]
    # gate_all      = pooler_output @ Wg_fused + bg -> [B_pad, NS*3 padded]
    cls = jnp.tanh(
        jnp.dot(h0_ref[...], wp_ref[...], preferred_element_type=jnp.float32)
        + bp_ref[...]
    )
    cls_ref[...] = cls
    gate_ref[...] = (
        jnp.dot(cls, wg_ref[...], preferred_element_type=jnp.float32)
        + bg_ref[...]
    )


def _span_kernel(x_ref, ws_ref, bs_ref, span_ref):
    # One grid step == one row-tile of tokens.
    # span_all[tile] = tokens_bf16 @ Ws_fused_bf16 + bs  -> [tile, NS*2 padded]
    span_ref[...] = (
        jnp.dot(x_ref[...], ws_ref[...], preferred_element_type=jnp.float32)
        + bs_ref[...]
    )


# ----------------------------- wrapper --------------------------------------


def bert_dst_forward(last_hidden_state, params, slot_keys, *, row_tile=512):
    """Returns (model_out, gate_logits, span_logits) like BERTDSTMain.forward."""
    B, S, H = last_hidden_state.shape
    NS = len(slot_keys)
    LANE, SUB = 128, 8

    # ---- fuse per-slot heads into lane-dense weight/bias slabs ----
    ng, nsp = NS * 3, NS * 2
    ng_pad, nsp_pad = _round_up(ng, LANE), _round_up(nsp, LANE)

    gate_w = params["gate_w"].transpose(1, 0, 2).reshape(H, ng)   # [H, NS*3]
    gate_b = params["gate_b"].reshape(1, ng)
    gate_w = jnp.pad(gate_w, ((0, 0), (0, ng_pad - ng)))
    gate_b = jnp.pad(gate_b, ((0, 0), (0, ng_pad - ng)))

    span_w = params["span_w"].transpose(1, 0, 2).reshape(H, nsp)  # [H, NS*2]
    span_b = params["span_b"].reshape(1, nsp)
    span_w = jnp.pad(span_w, ((0, 0), (0, nsp_pad - nsp)))
    span_b = jnp.pad(span_b, ((0, 0), (0, nsp_pad - nsp)))

    # ---- pooler + fused gate head (single tiny kernel, f32) ----
    B_pad = _round_up(B, SUB)
    h0 = last_hidden_state[:, 0, :]
    h0_pad = jnp.pad(h0, ((0, B_pad - B), (0, 0)))

    cls_pad, gate_all = pl.pallas_call(
        _pooler_gate_kernel,
        out_shape=(
            jax.ShapeDtypeStruct((B_pad, H), jnp.float32),
            jax.ShapeDtypeStruct((B_pad, ng_pad), jnp.float32),
        ),
    )(h0_pad, params["pooler_w"], params["pooler_b"], gate_w, gate_b)

    # ---- fused span head: row-tiled over tokens, bf16 streaming inputs ----
    BS = B * S
    tr = min(row_tile, _round_up(BS, SUB))
    BS_pad = _round_up(BS, tr)
    all_flat = last_hidden_state.reshape(BS, H)
    all_flat = jnp.pad(all_flat, ((0, BS_pad - BS), (0, 0)))
    all_bf16 = all_flat.astype(jnp.bfloat16)
    span_w_bf16 = span_w.astype(jnp.bfloat16)

    span_all = pl.pallas_call(
        _span_kernel,
        out_shape=jax.ShapeDtypeStruct((BS_pad, nsp_pad), jnp.float32),
        grid=(BS_pad // tr,),
        in_specs=[
            pl.BlockSpec((tr, H), lambda r: (r, 0)),          # token row-tile
            pl.BlockSpec((H, nsp_pad), lambda r: (0, 0)),     # fused span W
            pl.BlockSpec((1, nsp_pad), lambda r: (0, 0)),     # fused span b
        ],
        out_specs=pl.BlockSpec((tr, nsp_pad), lambda r: (r, 0)),
        compiler_params=pltpu.CompilerParams(
            dimension_semantics=("parallel",)
        ),
    )(all_bf16, span_w_bf16, span_b)

    cls_out = cls_pad[:B]
    gate_logits = {
        k: gate_all[:B, i * 3:(i + 1) * 3] for i, k in enumerate(slot_keys)
    }
    span_logits = {
        k: span_all[:BS, i * 2:(i + 1) * 2].reshape(B, S, 2)
        for i, k in enumerate(slot_keys)
    }
    model_out = {
        "last_hidden_state": last_hidden_state,
        "pooler_output": cls_out,
    }
    return model_out, gate_logits, span_logits


# ---------------------------- reference -------------------------------------


def _reference(last_hidden_state, params, slot_keys):
    h0 = last_hidden_state[:, 0, :]
    cls_out = jnp.tanh(h0 @ params["pooler_w"] + params["pooler_b"])
    gate_logits, span_logits = {}, {}
    for i, k in enumerate(slot_keys):
        gate_logits[k] = cls_out @ params["gate_w"][i] + params["gate_b"][i, 0]
        span_logits[k] = (
            last_hidden_state @ params["span_w"][i] + params["span_b"][i, 0]
        )
    return cls_out, gate_logits, span_logits


# ------------------------------ main ----------------------------------------


if __name__ == "__main__":
    B, S, H = 2, 8, 32                      # batch, seq, hidden
    slot_keys = sorted(["hotel.name", "hotel.area", "taxi.destination"])
    NS = len(slot_keys)

    key = jax.random.PRNGKey(0)
    k_h, k_pw, k_pb, k_gw, k_gb, k_sw, k_sb = jax.random.split(key, 7)

    last_hidden_state = jax.random.normal(k_h, (B, S, H), dtype=jnp.float32)

    scale = 0.02
    params = {
        # BERT pooler: Linear(H, H) + tanh
        "pooler_w": scale * jax.random.normal(k_pw, (H, H), dtype=jnp.float32),
        "pooler_b": scale * jax.random.normal(k_pb, (1, H), dtype=jnp.float32),
        # CLSClassifier per slot: Linear(H, 3)
        "gate_w": scale * jax.random.normal(k_gw, (NS, H, 3), dtype=jnp.float32),
        "gate_b": scale * jax.random.normal(k_gb, (NS, 1, 3), dtype=jnp.float32),
        # SpanClassifier per slot: Linear(H, 2)
        "span_w": scale * jax.random.normal(k_sw, (NS, H, 2), dtype=jnp.float32),
        "span_b": scale * jax.random.normal(k_sb, (NS, 1, 2), dtype=jnp.float32),
    }

    model_out, gate_logits, span_logits = bert_dst_forward(
        last_hidden_state, params, slot_keys
    )
    jax.block_until_ready(model_out["pooler_output"])
    for k in slot_keys:
        jax.block_until_ready(gate_logits[k])
        jax.block_until_ready(span_logits[k])

    # correctness check against plain-JAX f32 reference
    ref_cls, ref_gate, ref_span = _reference(last_hidden_state, params, slot_keys)
    assert jnp.allclose(model_out["pooler_output"], ref_cls, atol=1e-5)
    for k in slot_keys:
        assert gate_logits[k].shape == (B, 3)
        assert span_logits[k].shape == (B, S, 2)
        # gate/pooler path is f32 end-to-end
        assert jnp.allclose(gate_logits[k], ref_gate[k], atol=1e-5)
        # span path streams bf16 inputs (f32 accumulate) -> looser tolerance
        assert jnp.allclose(span_logits[k], ref_span[k], atol=1e-2)

    print("KERNEL_OK")
</pallas_src>

<mosaic_0001>
module attributes {stable_mosaic.version = 11 : i64} {
  func.func @_pooler_gate_kernel(%arg0: memref<8x32xf32, #tpu.memory_space<vmem>>, %arg1: memref<32x32xf32, #tpu.memory_space<vmem>>, %arg2: memref<1x32xf32, #tpu.memory_space<vmem>>, %arg3: memref<32x128xf32, #tpu.memory_space<vmem>>, %arg4: memref<1x128xf32, #tpu.memory_space<vmem>>, %arg5: memref<8x32xf32, #tpu.memory_space<vmem>>, %arg6: memref<8x128xf32, #tpu.memory_space<vmem>>) attributes {dimension_semantics = [], scalar_prefetch = 0 : i64, scratch_operands = 0 : i64, tpu.core_type = #tpu.core_type<tc>} {
    %c0 = arith.constant 0 : index
    %c0_0 = arith.constant 0 : index
    %0 = vector.load %arg0[%c0, %c0_0] : memref<8x32xf32, #tpu.memory_space<vmem>>, vector<8x32xf32>
    %c0_1 = arith.constant 0 : index
    %c0_2 = arith.constant 0 : index
    %1 = vector.load %arg1[%c0_1, %c0_2] : memref<32x32xf32, #tpu.memory_space<vmem>>, vector<32x32xf32>
    %cst = arith.constant dense<0.000000e+00> : vector<8x32xf32>
    %2 = tpu.matmul %0, %1, %cst {dimension_numbers = #tpu.dot_dimension_numbers<[1], [0], [0], [1], [0, 0, 1, 1], [], []>} : vector<8x32xf32>, vector<32x32xf32>, vector<8x32xf32> -> vector<8x32xf32>
    %c0_3 = arith.constant 0 : index
    %c0_4 = arith.constant 0 : index
    %3 = vector.load %arg2[%c0_3, %c0_4] : memref<1x32xf32, #tpu.memory_space<vmem>>, vector<1x32xf32>
    %4 = vector.broadcast %3 : vector<1x32xf32> to vector<8x32xf32>
    %5 = arith.addf %2, %4 : vector<8x32xf32>
    %6 = math.tanh %5 : vector<8x32xf32>
    %c0_5 = arith.constant 0 : index
    %c0_6 = arith.constant 0 : index
    %7 = vector.load %arg5[%c0_5, %c0_6] : memref<8x32xf32, #tpu.memory_space<vmem>>, vector<8x32xf32>
    tpu.vector_store %arg5[%c0_5, %c0_6], %6 {strides = array<i32>} : memref<8x32xf32, #tpu.memory_space<vmem>>, vector<8x32xf32>,
    %c0_7 = arith.constant 0 : index
    %c0_8 = arith.constant 0 : index
    %8 = vector.load %arg3[%c0_7, %c0_8] : memref<32x128xf32, #tpu.memory_space<vmem>>, vector<32x128xf32>
    %cst_9 = arith.constant dense<0.000000e+00> : vector<8x128xf32>
    %9 = tpu.matmul %6, %8, %cst_9 {dimension_numbers = #tpu.dot_dimension_numbers<[1], [0], [0], [1], [0, 0, 1, 1], [], []>} : vector<8x32xf32>, vector<32x128xf32>, vector<8x128xf32> -> vector<8x128xf32>
    %c0_10 = arith.constant 0 : index
    %c0_11 = arith.constant 0 : index
    %10 = vector.load %arg4[%c0_10, %c0_11] : memref<1x128xf32, #tpu.memory_space<vmem>>, vector<1x128xf32>
    %11 = vector.broadcast %10 : vector<1x128xf32> to vector<8x128xf32>
    %12 = arith.addf %9, %11 : vector<8x128xf32>
    %c0_12 = arith.constant 0 : index
    %c0_13 = arith.constant 0 : index
    %13 = vector.load %arg6[%c0_12, %c0_13] : memref<8x128xf32, #tpu.memory_space<vmem>>, vector<8x128xf32>
    tpu.vector_store %arg6[%c0_12, %c0_13], %12 {strides = array<i32>} : memref<8x128xf32, #tpu.memory_space<vmem>>, vector<8x128xf32>,
    return
  }
}

</mosaic_0001>

<bundles_post_ra>
// kernel: tpu_custom_call.1
= control target key start
LH: loop header
LB: loop body
LE: loop exit
PB: predicated region body
PF: predicated region fallthrough
CT: control target
= control target key end

     0   :  { %12 = vsyncpa [#allocation3], 0  ;;  %s377_s0 = inlined_call_operand.hbm [shape: f32[8,32], index: 0, kind: input, shape index: {}]   ;;  %s378_s1 = inlined_call_operand.hbm [shape: f32[32,32], index: 1, kind: input, shape index: {}]   ;;  %s379_s2 = inlined_call_operand.vmem [shape: f32[1,32], index: 2, kind: input, shape index: {}]   ;;  %s380_s3 = inlined_call_operand.hbm [shape: f32[32,128], index: 3, kind: input, shape index: {}]   ;;  %s381_s4 = inlined_call_operand.vmem [shape: f32[1,128], index: 4, kind: input, shape index: {}]   ;;  %s382_s5 = inlined_call_operand.hbm [shape: f32[8,32], index: 5, kind: output, shape index: {0}]   ;;  %s383_s6 = inlined_call_operand.hbm [shape: f32[8,128], index: 6, kind: output, shape index: {1}]  }
   0x1   :  { %13 = vsyncpa [#allocation6], 0 }
   0x2   :  { %14 = vsyncpa [#allocation4], 0  ;;  %s31_s23 = sshll.u32 %s378_s1, 4  ;;  %s32_s23 = int_to_ptr.hbm [resolvable:$true] %s31_s23 }
   0x3   :  { %15 = vsyncpa [#allocation10], 0  ;;  %s311_s24 = smov [#allocation5]   ;;  %s21_s28 = sshll.u32 %s377_s0, 4  ;;  %s22_s28 = int_to_ptr.hbm [resolvable:$true] %s21_s28 }
   0x4   :  { %s33_s25 = sshll.u32 %s311_s24, 4  ;;  %s312_s29 = smov 128   ;;  %s34_s25 = int_to_ptr.vmem [resolvable:$true] %s33_s25 }
   0x5   :  { %s313_s30 = smov 8   ;;  %s314_s7 = smov [#allocation2]  }
   0x6   :  { %39 = dma.hbm_to_vmem [thread:$0]  %s32_s23, 512, %s34_s25, [#allocation6], %s312_s29, %s312_s29, %s313_s30  }
   0x7   :  { %s23_s8 = sshll.u32 %s314_s7, 4  ;;  %s46_s11 = sshll.u32 %s380_s3, 4  ;;  %s24_s8 = int_to_ptr.vmem [resolvable:$true] %s23_s8  ;;  %s47_s11 = int_to_ptr.hbm [resolvable:$true] %s46_s11 }
   0x8   :  { %26 = dma.hbm_to_vmem [thread:$0]  %s22_s28, 128, %s24_s8, [#allocation3]  }
   0x9   :  { %s315_s1 = smov [#allocation7]  }
   0xa   :  { %s48_s12 = sshll.u32 %s315_s1, 4  ;;  %s49_s12 = int_to_ptr.vmem [resolvable:$true] %s48_s12 }
   0xb   :  { %54 = dma.hbm_to_vmem [thread:$0]  %s47_s11, 512, %s49_s12, [#allocation6], %s312_s29, %s312_s29, %s313_s30  }
   0xc   :  { %303 = dma.done.wait [#allocation3], 128  }
   0xd   :  { %304 = vsyncadd [#allocation3], 4294967168 }
   0xe   :  { %305 = dma.done.wait [#allocation6], 1024  }
   0xf   :  { %306 = vsyncadd [#allocation6], 4294966272  ;;  %v73_v0 = vld [vmem:[#allocation5 + $0x18] sm:$0xff]  ;;  %v72_v1 = vld [vmem:[#allocation5 + $0x10] sm:$0xff]  ;;  %vm78_vm0 = vcmask 261120   ;;  %s316_s13 = smov [#allocation8]  }
  0x10   :  { %94 = vmatpush.msra.mxu0 %v73_v0  ;;  %v71_v2 = vld [vmem:[#allocation5 + $0x8] sm:$0xff]  ;;  %v70_v3 = vld [vmem:[#allocation5] sm:$0xff]  ;;  %v69_v4 = vld [vmem:[#allocation2] sm:$0xff]  ;;  %s141_s14 = sshll.u32 %s316_s13, 4  ;;  %s143_s17 = sshll.u32 %s382_s5, 4  ;;  %s142_s14 = int_to_ptr.vmem [resolvable:$true] %s141_s14  ;;  %s144_s17 = int_to_ptr.hbm [resolvable:$true] %s143_s17 }
  0x11   :  { %v107_v5 = vld [vmem:[#allocation7 + $0x18] sm:$0xff]  ;;  %v106_v6 = vld [vmem:[#allocation7 + $0x10] sm:$0xff]  ;;  %v105_v7 = vld [vmem:[#allocation7 + $0x8] sm:$0xff]  ;;  %s154_s23 = sshll.u32 %s383_s6, 4  ;;  %s155_s23 = int_to_ptr.hbm [resolvable:$true] %s154_s23 }
  0x12   :  { %95 = vmatpush.msra.mxu0 %v72_v1  ;;  %127 = vmatpush.msra.mxu1 %v107_v5  ;;  %v104_v8 = vld [vmem:[#allocation7] sm:$0xff]  ;;  %v179_v9 = vld [vmem:[%s379_s2] ss:$0 sm:$0xff]  ;;  %s317_s2 = smov [#allocation9]  }
  0x13   :  { %v180_v13 = vld [vmem:[%s381_s4] ss:$0 sm:$0xff]  ;;  %s152_s20 = sshll.u32 %s317_s2, 4  ;;  %s153_s20 = int_to_ptr.vmem [resolvable:$true] %s152_s20 }
  0x14   :  { %96 = vmatpush.msra.mxu0 %v71_v2  ;;  %128 = vmatpush.msra.mxu1 %v106_v6 }
  0x16   :  { %97 = vmatpush.msra.mxu0 %v70_v3  ;;  %129 = vmatpush.msra.mxu1 %v105_v7 }
  0x17   :  { %170 = vmatmul.msk.f32.vlgmr.msra.gmra.mxu0 %vm78_vm0, %v69_v4 }
  0x18   :  { %130 = vmatpush.msra.mxu1 %v104_v8 }
  0x94   :  { %v99_v10 = vpop.f32.mrf.mxu0 }
  0x95   :  { %v100_v11 = vadd.f32 %v179_v9, %v99_v10 }
  0x97   :  { %181 = vtanh.f32 %v100_v11 }
  0x9d   :  { %v182_v12 = vpop.eup %181 }
  0x9e   :  { %103 = vst.msk [vmem:[#allocation8] sm:$0xff] %vm78_vm0, %v182_v12  ;;  %171 = vmatmul.msk.f32.vlgmr.msra.gmra.mxu1 %vm78_vm0, %v182_v12 }
  0x9f   :  { %146 = dma.vmem_to_hbm [thread:$0]  %s142_s14, 128, %s144_s17, [#allocation4]  }
 0x11b   :  { %v132_v14 = vpop.f32.mrf.mxu1 }
 0x11c   :  { %v133_v15 = vadd.f32 %v180_v13, %v132_v14 }
 0x11e   :  { %135 = vst [vmem:[#allocation9] sm:$0xff] %v133_v15 }
 0x11f   :  { %157 = dma.vmem_to_hbm [thread:$0]  %s153_s20, 128, %s155_s23, [#allocation10]  }
 0x120   :  { %307 = dma.done.wait [#allocation4], 128  }
 0x121   :  { %308 = vsyncadd [#allocation4], 4294967168 }
 0x122   :  { %309 = dma.done.wait [#allocation10], 128  }
 0x123   :  { %310 = vsyncadd [#allocation10], 4294967168 }
 0x124   :  { %166 = vsyncpa [#allocation3], 1 }
 0x125   :  { %167 = vsyncpa [#allocation6], 1 }
 0x126   :  { %168 = vsyncpa [#allocation4], 1 }
 0x127   :  { %169 = vsyncpa [#allocation10], 1 }

</bundles_post_ra>
